<compile_context>
chip_gen: v7x
topology: tpu7x:2x2x1
jax: 0.10.0
libtpu: 0.0.40
codegen_flags: <defaults>
</compile_context>

<pallas_src>
import functools
import math

import jax
import jax.numpy as jnp
from jax.experimental import pallas as pl
from jax.experimental.pallas import tpu as pltpu

OUT_PAD = 128          # lane-dense padded output width for the last layer
NEG_PAD = -1e30        # pad bias: exp underflows to exactly 0 in f32


def gcn_kernel(x_ref, adj_ref, wstk_ref, w7_ref, bmid_ref, b7_ref, out_ref):
    # Per-graph block: x_ref (N, nhid) bf16, adj_ref (N, N) bf16,
    # wstk_ref (6, nhid, nhid) bf16, w7_ref (nhid, 128) bf16,
    # bmid_ref (6, nhid) f32, b7_ref (1, 128) f32, out_ref (N, 128) f32.
    adj = adj_ref[...]                    # reused by every layer
    bmid = bmid_ref[...]

    def gc(h, w_bf16, b_row):
        # support = h @ W ; out = adj @ support + b   (f32 MXU accumulation)
        support = jnp.dot(h.astype(jnp.bfloat16), w_bf16,
                          preferred_element_type=jnp.float32)
        agg = jnp.dot(adj, support.astype(jnp.bfloat16),
                      preferred_element_type=jnp.float32)
        return agg + b_row

    def relu(v):
        return jnp.maximum(v, 0.0)

    x = x_ref[...]                                       # (N, nhid) bf16

    h = relu(gc(x, wstk_ref[0], bmid[0:1, :]))           # gc1 + relu
    h = relu(gc(h, wstk_ref[1], bmid[1:2, :]))           # gc2 + relu
    h = relu(gc(h, wstk_ref[2], bmid[2:3, :])) + h       # gc3 + relu + skip
    h = relu(gc(h, wstk_ref[3], bmid[3:4, :])) + h       # gc4 + relu + skip
    h = relu(gc(h, wstk_ref[4], bmid[4:5, :])) + h       # gc5 + relu + skip
    h = relu(gc(h, wstk_ref[5], bmid[5:6, :]))           # gc6 + relu

    # gc7 reordered: aggregate at 32 lanes, then expand to 128 lanes.
    #   adj @ (h @ W7) == (adj @ h) @ W7
    agg = jnp.dot(adj, h.astype(jnp.bfloat16),
                  preferred_element_type=jnp.float32)    # (N, nhid) f32
    logits = jnp.dot(agg.astype(jnp.bfloat16), w7_ref[...],
                     preferred_element_type=jnp.float32) + b7_ref[...]

    # log_softmax over dim=1 (class axis), f32 throughout; pad columns hold
    # ~ -1e30 and never affect max / sum-exp over the real classes.
    m = jnp.max(logits, axis=1, keepdims=True)
    shifted = logits - m
    lse = jnp.log(jnp.sum(jnp.exp(shifted), axis=1, keepdims=True))
    out_ref[...] = shifted - lse                         # unmasked full-lane store


def pack_gcn_params(params):
    """One-time host-side packing of gc1..gc7 parameters.

    params: list of (W, b) with W: (f_in, f_out), b: (1, f_out).
    Returns (packed_tuple, nclass)."""
    nfeat, nhid = params[0][0].shape
    nclass = params[-1][0].shape[1]
    if nfeat > nhid:
        # TODO(synk): nfeat > nhid needs a separate (nfeat, nhid) W1 operand.
        raise NotImplementedError("pack_gcn_params assumes nfeat <= nhid")

    # Fold W1 into the stack (zero-row-padded if nfeat < nhid; the wrapper
    # zero-column-pads x to match, so x_pad @ W1_pad == x @ W1).
    w1 = jnp.zeros((nhid, nhid), jnp.float32).at[:nfeat, :].set(params[0][0])
    wstk = jnp.stack([w1] + [params[i][0] for i in range(1, 6)]
                     ).astype(jnp.bfloat16)                        # (6, nhid, nhid)
    bmid = jnp.concatenate([params[i][1] for i in range(6)], axis=0
                           ).astype(jnp.float32)                   # (6, nhid)
    w7 = jnp.zeros((nhid, OUT_PAD), jnp.float32
                   ).at[:, :nclass].set(params[6][0]).astype(jnp.bfloat16)
    b7 = jnp.full((1, OUT_PAD), jnp.float32(NEG_PAD)
                  ).at[:, :nclass].set(params[6][1])
    return (wstk, w7, bmid, b7), nclass


@functools.partial(jax.jit, static_argnames=("nclass",))
def gcn_forward(x, adj, packed, *, nclass):
    """x: (B, N, nfeat) or (N, nfeat); adj: (B, N, N) or (N, N)."""
    wstk, w7, bmid, b7 = packed
    nhid = wstk.shape[1]

    squeeze = x.ndim == 2
    if squeeze:
        x, adj = x[None], adj[None]
    B, N, nfeat = x.shape
    if nfeat < nhid:                                   # match zero-row-padded W1
        x = jnp.pad(x, ((0, 0), (0, 0), (0, nhid - nfeat)))

    x_bf = x.astype(jnp.bfloat16)
    adj_bf = adj.astype(jnp.bfloat16)

    # Advisory cost estimate (per full batch) for the XLA scheduler.
    flops_graph = 6 * 2 * N * (nhid * nhid + N * nhid)          # gc1..gc6
    flops_graph += 2 * N * (N * nhid + nhid * OUT_PAD)          # gc7 (reordered)
    bytes_accessed = sum(int(a.size * a.dtype.itemsize)
                         for a in (x_bf, adj_bf, wstk, w7, bmid, b7))
    bytes_accessed += B * N * OUT_PAD * 4                       # output
    cost = pl.CostEstimate(flops=int(B * flops_graph),
                           transcendentals=int(B * N * OUT_PAD),
                           bytes_accessed=int(bytes_accessed))

    grid_spec = pltpu.PrefetchScalarGridSpec(
        num_scalar_prefetch=0,
        grid=(B,),
        in_specs=[
            pl.BlockSpec((pl.Squeezed(), N, nhid), lambda b: (b, 0, 0)),   # x
            pl.BlockSpec((pl.Squeezed(), N, N), lambda b: (b, 0, 0)),      # adj
            pl.BlockSpec(wstk.shape, lambda b: (0, 0, 0)),                 # gc1..gc6 W
            pl.BlockSpec(w7.shape, lambda b: (0, 0)),                      # gc7 W (padded)
            pl.BlockSpec(bmid.shape, lambda b: (0, 0)),                    # gc1..gc6 b
            pl.BlockSpec(b7.shape, lambda b: (0, 0)),                      # gc7 b (padded)
        ],
        out_specs=pl.BlockSpec((pl.Squeezed(), N, OUT_PAD), lambda b: (b, 0, 0)),
    )

    # TODO(synk): for large B, a further win is stacking all graphs' node rows
    # for the h@W matmuls (raises MXU tile utilization) with per-graph adj
    # matmuls in a fori_loop; kept per-graph grid blocks here so graphs shard
    # across v7x's two TensorCores via dimension_semantics.
    out_padded = pl.pallas_call(
        gcn_kernel,
        out_shape=jax.ShapeDtypeStruct((B, N, OUT_PAD), jnp.float32),
        grid_spec=grid_spec,
        compiler_params=pltpu.CompilerParams(
            dimension_semantics=("parallel",)),
        cost_estimate=cost,
    )(x_bf, adj_bf, wstk, w7, bmid, b7)

    out = out_padded[..., :nclass]
    if squeeze:
        out = out[0]
    return out


def init_gc_params(key, fan_in, fan_out):
    # Matches pygcn GraphConvolution.reset_parameters: U(-stdv, stdv),
    # stdv = 1 / sqrt(out_features); bias kept as (1, out) for broadcasting.
    kw, kb = jax.random.split(key)
    stdv = 1.0 / math.sqrt(fan_out)
    w = jax.random.uniform(kw, (fan_in, fan_out), jnp.float32, -stdv, stdv)
    b = jax.random.uniform(kb, (1, fan_out), jnp.float32, -stdv, stdv)
    return w, b


if __name__ == "__main__":
    key = jax.random.PRNGKey(0)

    B = 4          # graphs in the batch (parallel grid / dual-TC sharding on v7x)
    N = 64         # nodes per graph
    nfeat = 32
    nhid = 32
    nclass = 8
    # dropout rate irrelevant in eval mode (identity)

    k_x, k_adj, *k_layers = jax.random.split(key, 2 + 7)

    x = jax.random.normal(k_x, (B, N, nfeat), jnp.float32)

    # Deterministic row-normalized dense adjacency (with self loops), per graph.
    a = (jax.random.uniform(k_adj, (B, N, N)) < 0.1).astype(jnp.float32)
    a = jnp.maximum(a, jnp.swapaxes(a, -1, -2))
    a = a + jnp.eye(N, dtype=jnp.float32)[None]
    adj = a / jnp.sum(a, axis=-1, keepdims=True)

    dims = [(nfeat, nhid), (nhid, nhid), (nhid, nhid), (nhid, nhid),
            (nhid, nhid), (nhid, nhid), (nhid, nclass)]
    params = [init_gc_params(k, fi, fo) for k, (fi, fo) in zip(k_layers, dims)]

    packed, nclass_packed = pack_gcn_params(params)   # one-time packing
    assert nclass_packed == nclass

    out = gcn_forward(x, adj, packed, nclass=nclass)
    jax.block_until_ready(out)
    assert out.shape == (B, N, nclass)
    assert bool(jnp.all(jnp.isfinite(out)))
    # log_softmax rows must normalize: sum(exp) == 1
    assert bool(jnp.allclose(jnp.sum(jnp.exp(out), axis=-1), 1.0, atol=1e-3))
    print("KERNEL_OK")
</pallas_src>

<mosaic_0001>
module attributes {stable_mosaic.version = 11 : i64} {
  func.func @gcn_kernel(%arg0: i32, %arg1: memref<1x64x32xbf16, #tpu.memory_space<vmem>>, %arg2: memref<1x64x64xbf16, #tpu.memory_space<vmem>>, %arg3: memref<6x32x32xbf16, #tpu.memory_space<vmem>>, %arg4: memref<32x128xbf16, #tpu.memory_space<vmem>>, %arg5: memref<6x32xf32, #tpu.memory_space<vmem>>, %arg6: memref<1x128xf32, #tpu.memory_space<vmem>>, %arg7: memref<1x64x128xf32, #tpu.memory_space<vmem>>) attributes {dimension_semantics = [#tpu.dimension_semantics<parallel>], iteration_bounds = array<i64: 4>, scalar_prefetch = 0 : i64, scratch_operands = 0 : i64, tpu.core_type = #tpu.core_type<tc>, window_params = [{transform_indices = @transform_0, window_bounds = array<i64: 1, 64, 32>}, {transform_indices = @transform_1, window_bounds = array<i64: 1, 64, 64>}, {pipeline_mode = #tpu.pipeline_mode<synchronous>, transform_indices = @transform_2, window_bounds = array<i64: 6, 32, 32>}, {pipeline_mode = #tpu.pipeline_mode<synchronous>, transform_indices = @transform_3, window_bounds = array<i64: 32, 128>}, {pipeline_mode = #tpu.pipeline_mode<synchronous>, transform_indices = @transform_4, window_bounds = array<i64: 6, 32>}, {pipeline_mode = #tpu.pipeline_mode<synchronous>, transform_indices = @transform_5, window_bounds = array<i64: 1, 128>}, {transform_indices = @transform_6, window_bounds = array<i64: 1, 64, 128>}]} {
    %c0 = arith.constant 0 : index
    %c0_0 = arith.constant 0 : index
    %c0_1 = arith.constant 0 : index
    %0 = vector.load %arg2[%c0, %c0_0, %c0_1] : memref<1x64x64xbf16, #tpu.memory_space<vmem>>, vector<1x64x64xbf16>
    %1 = vector.shape_cast %0 : vector<1x64x64xbf16> to vector<64x64xbf16>
    %c0_2 = arith.constant 0 : index
    %c0_3 = arith.constant 0 : index
    %2 = vector.load %arg5[%c0_2, %c0_3] : memref<6x32xf32, #tpu.memory_space<vmem>>, vector<6x32xf32>
    %c0_4 = arith.constant 0 : index
    %c0_5 = arith.constant 0 : index
    %c0_6 = arith.constant 0 : index
    %3 = vector.load %arg1[%c0_4, %c0_5, %c0_6] : memref<1x64x32xbf16, #tpu.memory_space<vmem>>, vector<1x64x32xbf16>
    %4 = vector.shape_cast %3 : vector<1x64x32xbf16> to vector<64x32xbf16>
    %c0_7 = arith.constant 0 : index
    %c0_8 = arith.constant 0 : index
    %c0_9 = arith.constant 0 : index
    %5 = vector.load %arg3[%c0_7, %c0_8, %c0_9] : memref<6x32x32xbf16, #tpu.memory_space<vmem>>, vector<1x32x32xbf16>
    %6 = vector.shape_cast %5 : vector<1x32x32xbf16> to vector<32x32xbf16>
    %7 = vector.extract_strided_slice %2 {offsets = [0, 0], sizes = [1, 32], strides = [1, 1]} : vector<6x32xf32> to vector<1x32xf32>
    %cst = arith.constant dense<0.000000e+00> : vector<64x32xf32>
    %8 = tpu.matmul %4, %6, %cst {dimension_numbers = #tpu.dot_dimension_numbers<[1], [0], [0], [1], [0, 0, 1, 1], [], []>} : vector<64x32xbf16>, vector<32x32xbf16>, vector<64x32xf32> -> vector<64x32xf32>
    %9 = arith.truncf %8 : vector<64x32xf32> to vector<64x32xbf16>
    %cst_10 = arith.constant dense<0.000000e+00> : vector<64x32xf32>
    %10 = tpu.matmul %1, %9, %cst_10 {dimension_numbers = #tpu.dot_dimension_numbers<[1], [0], [0], [1], [0, 0, 1, 1], [], []>} : vector<64x64xbf16>, vector<64x32xbf16>, vector<64x32xf32> -> vector<64x32xf32>
    %11 = vector.broadcast %7 : vector<1x32xf32> to vector<64x32xf32>
    %12 = arith.addf %10, %11 : vector<64x32xf32>
    %cst_11 = arith.constant 0.000000e+00 : f32
    %13 = vector.broadcast %cst_11 : f32 to vector<64x32xf32>
    %14 = arith.maximumf %12, %13 : vector<64x32xf32>
    %c1 = arith.constant 1 : index
    %c0_12 = arith.constant 0 : index
    %c0_13 = arith.constant 0 : index
    %15 = vector.load %arg3[%c1, %c0_12, %c0_13] : memref<6x32x32xbf16, #tpu.memory_space<vmem>>, vector<1x32x32xbf16>
    %16 = vector.shape_cast %15 : vector<1x32x32xbf16> to vector<32x32xbf16>
    %17 = vector.extract_strided_slice %2 {offsets = [1, 0], sizes = [1, 32], strides = [1, 1]} : vector<6x32xf32> to vector<1x32xf32>
    %18 = arith.truncf %14 : vector<64x32xf32> to vector<64x32xbf16>
    %cst_14 = arith.constant dense<0.000000e+00> : vector<64x32xf32>
    %19 = tpu.matmul %18, %16, %cst_14 {dimension_numbers = #tpu.dot_dimension_numbers<[1], [0], [0], [1], [0, 0, 1, 1], [], []>} : vector<64x32xbf16>, vector<32x32xbf16>, vector<64x32xf32> -> vector<64x32xf32>
    %20 = arith.truncf %19 : vector<64x32xf32> to vector<64x32xbf16>
    %cst_15 = arith.constant dense<0.000000e+00> : vector<64x32xf32>
    %21 = tpu.matmul %1, %20, %cst_15 {dimension_numbers = #tpu.dot_dimension_numbers<[1], [0], [0], [1], [0, 0, 1, 1], [], []>} : vector<64x64xbf16>, vector<64x32xbf16>, vector<64x32xf32> -> vector<64x32xf32>
    %22 = vector.broadcast %17 : vector<1x32xf32> to vector<64x32xf32>
    %23 = arith.addf %21, %22 : vector<64x32xf32>
    %cst_16 = arith.constant 0.000000e+00 : f32
    %24 = vector.broadcast %cst_16 : f32 to vector<64x32xf32>
    %25 = arith.maximumf %23, %24 : vector<64x32xf32>
    %c2 = arith.constant 2 : index
    %c0_17 = arith.constant 0 : index
    %c0_18 = arith.constant 0 : index
    %26 = vector.load %arg3[%c2, %c0_17, %c0_18] : memref<6x32x32xbf16, #tpu.memory_space<vmem>>, vector<1x32x32xbf16>
    %27 = vector.shape_cast %26 : vector<1x32x32xbf16> to vector<32x32xbf16>
    %28 = vector.extract_strided_slice %2 {offsets = [2, 0], sizes = [1, 32], strides = [1, 1]} : vector<6x32xf32> to vector<1x32xf32>
    %29 = arith.truncf %25 : vector<64x32xf32> to vector<64x32xbf16>
    %cst_19 = arith.constant dense<0.000000e+00> : vector<64x32xf32>
    %30 = tpu.matmul %29, %27, %cst_19 {dimension_numbers = #tpu.dot_dimension_numbers<[1], [0], [0], [1], [0, 0, 1, 1], [], []>} : vector<64x32xbf16>, vector<32x32xbf16>, vector<64x32xf32> -> vector<64x32xf32>
    %31 = arith.truncf %30 : vector<64x32xf32> to vector<64x32xbf16>
    %cst_20 = arith.constant dense<0.000000e+00> : vector<64x32xf32>
    %32 = tpu.matmul %1, %31, %cst_20 {dimension_numbers = #tpu.dot_dimension_numbers<[1], [0], [0], [1], [0, 0, 1, 1], [], []>} : vector<64x64xbf16>, vector<64x32xbf16>, vector<64x32xf32> -> vector<64x32xf32>
    %33 = vector.broadcast %28 : vector<1x32xf32> to vector<64x32xf32>
    %34 = arith.addf %32, %33 : vector<64x32xf32>
    %cst_21 = arith.constant 0.000000e+00 : f32
    %35 = vector.broadcast %cst_21 : f32 to vector<64x32xf32>
    %36 = arith.maximumf %34, %35 : vector<64x32xf32>
    %37 = arith.addf %36, %25 : vector<64x32xf32>
    %c3 = arith.constant 3 : index
    %c0_22 = arith.constant 0 : index
    %c0_23 = arith.constant 0 : index
    %38 = vector.load %arg3[%c3, %c0_22, %c0_23] : memref<6x32x32xbf16, #tpu.memory_space<vmem>>, vector<1x32x32xbf16>
    %39 = vector.shape_cast %38 : vector<1x32x32xbf16> to vector<32x32xbf16>
    %40 = vector.extract_strided_slice %2 {offsets = [3, 0], sizes = [1, 32], strides = [1, 1]} : vector<6x32xf32> to vector<1x32xf32>
    %41 = arith.truncf %37 : vector<64x32xf32> to vector<64x32xbf16>
    %cst_24 = arith.constant dense<0.000000e+00> : vector<64x32xf32>
    %42 = tpu.matmul %41, %39, %cst_24 {dimension_numbers = #tpu.dot_dimension_numbers<[1], [0], [0], [1], [0, 0, 1, 1], [], []>} : vector<64x32xbf16>, vector<32x32xbf16>, vector<64x32xf32> -> vector<64x32xf32>
    %43 = arith.truncf %42 : vector<64x32xf32> to vector<64x32xbf16>
    %cst_25 = arith.constant dense<0.000000e+00> : vector<64x32xf32>
    %44 = tpu.matmul %1, %43, %cst_25 {dimension_numbers = #tpu.dot_dimension_numbers<[1], [0], [0], [1], [0, 0, 1, 1], [], []>} : vector<64x64xbf16>, vector<64x32xbf16>, vector<64x32xf32> -> vector<64x32xf32>
    %45 = vector.broadcast %40 : vector<1x32xf32> to vector<64x32xf32>
    %46 = arith.addf %44, %45 : vector<64x32xf32>
    %cst_26 = arith.constant 0.000000e+00 : f32
    %47 = vector.broadcast %cst_26 : f32 to vector<64x32xf32>
    %48 = arith.maximumf %46, %47 : vector<64x32xf32>
    %49 = arith.addf %48, %37 : vector<64x32xf32>
    %c4 = arith.constant 4 : index
    %c0_27 = arith.constant 0 : index
    %c0_28 = arith.constant 0 : index
    %50 = vector.load %arg3[%c4, %c0_27, %c0_28] : memref<6x32x32xbf16, #tpu.memory_space<vmem>>, vector<1x32x32xbf16>
    %51 = vector.shape_cast %50 : vector<1x32x32xbf16> to vector<32x32xbf16>
    %52 = vector.extract_strided_slice %2 {offsets = [4, 0], sizes = [1, 32], strides = [1, 1]} : vector<6x32xf32> to vector<1x32xf32>
    %53 = arith.truncf %49 : vector<64x32xf32> to vector<64x32xbf16>
    %cst_29 = arith.constant dense<0.000000e+00> : vector<64x32xf32>
    %54 = tpu.matmul %53, %51, %cst_29 {dimension_numbers = #tpu.dot_dimension_numbers<[1], [0], [0], [1], [0, 0, 1, 1], [], []>} : vector<64x32xbf16>, vector<32x32xbf16>, vector<64x32xf32> -> vector<64x32xf32>
    %55 = arith.truncf %54 : vector<64x32xf32> to vector<64x32xbf16>
    %cst_30 = arith.constant dense<0.000000e+00> : vector<64x32xf32>
    %56 = tpu.matmul %1, %55, %cst_30 {dimension_numbers = #tpu.dot_dimension_numbers<[1], [0], [0], [1], [0, 0, 1, 1], [], []>} : vector<64x64xbf16>, vector<64x32xbf16>, vector<64x32xf32> -> vector<64x32xf32>
    %57 = vector.broadcast %52 : vector<1x32xf32> to vector<64x32xf32>
    %58 = arith.addf %56, %57 : vector<64x32xf32>
    %cst_31 = arith.constant 0.000000e+00 : f32
    %59 = vector.broadcast %cst_31 : f32 to vector<64x32xf32>
    %60 = arith.maximumf %58, %59 : vector<64x32xf32>
    %61 = arith.addf %60, %49 : vector<64x32xf32>
    %c5 = arith.constant 5 : index
    %c0_32 = arith.constant 0 : index
    %c0_33 = arith.constant 0 : index
    %62 = vector.load %arg3[%c5, %c0_32, %c0_33] : memref<6x32x32xbf16, #tpu.memory_space<vmem>>, vector<1x32x32xbf16>
    %63 = vector.shape_cast %62 : vector<1x32x32xbf16> to vector<32x32xbf16>
    %64 = vector.extract_strided_slice %2 {offsets = [5, 0], sizes = [1, 32], strides = [1, 1]} : vector<6x32xf32> to vector<1x32xf32>
    %65 = arith.truncf %61 : vector<64x32xf32> to vector<64x32xbf16>
    %cst_34 = arith.constant dense<0.000000e+00> : vector<64x32xf32>
    %66 = tpu.matmul %65, %63, %cst_34 {dimension_numbers = #tpu.dot_dimension_numbers<[1], [0], [0], [1], [0, 0, 1, 1], [], []>} : vector<64x32xbf16>, vector<32x32xbf16>, vector<64x32xf32> -> vector<64x32xf32>
    %67 = arith.truncf %66 : vector<64x32xf32> to vector<64x32xbf16>
    %cst_35 = arith.constant dense<0.000000e+00> : vector<64x32xf32>
    %68 = tpu.matmul %1, %67, %cst_35 {dimension_numbers = #tpu.dot_dimension_numbers<[1], [0], [0], [1], [0, 0, 1, 1], [], []>} : vector<64x64xbf16>, vector<64x32xbf16>, vector<64x32xf32> -> vector<64x32xf32>
    %69 = vector.broadcast %64 : vector<1x32xf32> to vector<64x32xf32>
    %70 = arith.addf %68, %69 : vector<64x32xf32>
    %cst_36 = arith.constant 0.000000e+00 : f32
    %71 = vector.broadcast %cst_36 : f32 to vector<64x32xf32>
    %72 = arith.maximumf %70, %71 : vector<64x32xf32>
    %73 = arith.truncf %72 : vector<64x32xf32> to vector<64x32xbf16>
    %cst_37 = arith.constant dense<0.000000e+00> : vector<64x32xf32>
    %74 = tpu.matmul %1, %73, %cst_37 {dimension_numbers = #tpu.dot_dimension_numbers<[1], [0], [0], [1], [0, 0, 1, 1], [], []>} : vector<64x64xbf16>, vector<64x32xbf16>, vector<64x32xf32> -> vector<64x32xf32>
    %75 = arith.truncf %74 : vector<64x32xf32> to vector<64x32xbf16>
    %c0_38 = arith.constant 0 : index
    %c0_39 = arith.constant 0 : index
    %76 = vector.load %arg4[%c0_38, %c0_39] : memref<32x128xbf16, #tpu.memory_space<vmem>>, vector<32x128xbf16>
    %cst_40 = arith.constant dense<0.000000e+00> : vector<64x128xf32>
    %77 = tpu.matmul %75, %76, %cst_40 {dimension_numbers = #tpu.dot_dimension_numbers<[1], [0], [0], [1], [0, 0, 1, 1], [], []>} : vector<64x32xbf16>, vector<32x128xbf16>, vector<64x128xf32> -> vector<64x128xf32>
    %c0_41 = arith.constant 0 : index
    %c0_42 = arith.constant 0 : index
    %78 = vector.load %arg6[%c0_41, %c0_42] : memref<1x128xf32, #tpu.memory_space<vmem>>, vector<1x128xf32>
    %79 = vector.broadcast %78 : vector<1x128xf32> to vector<64x128xf32>
    %80 = arith.addf %77, %79 : vector<64x128xf32>
    %cst_43 = arith.constant dense<0xFF800000> : vector<64xf32>
    %81 = vector.multi_reduction <maximumf>, %80, %cst_43 [1] : vector<64x128xf32> to vector<64xf32>
    %82 = vector.shape_cast %81 : vector<64xf32> to vector<64x1xf32>
    %83 = vector.broadcast %82 : vector<64x1xf32> to vector<64x128xf32>
    %84 = arith.subf %80, %83 : vector<64x128xf32>
    %85 = math.exp %84 : vector<64x128xf32>
    %cst_44 = arith.constant dense<0.000000e+00> : vector<64xf32>
    %86 = vector.multi_reduction <add>, %85, %cst_44 [1] : vector<64x128xf32> to vector<64xf32>
    %87 = vector.shape_cast %86 : vector<64xf32> to vector<64x1xf32>
    %88 = math.log %87 : vector<64x1xf32>
    %89 = vector.broadcast %88 : vector<64x1xf32> to vector<64x128xf32>
    %90 = arith.subf %84, %89 : vector<64x128xf32>
    %c0_45 = arith.constant 0 : index
    %c0_46 = arith.constant 0 : index
    %c0_47 = arith.constant 0 : index
    %91 = vector.load %arg7[%c0_45, %c0_46, %c0_47] : memref<1x64x128xf32, #tpu.memory_space<vmem>>, vector<1x64x128xf32>
    %92 = vector.shape_cast %91 : vector<1x64x128xf32> to vector<64x128xf32>
    %93 = vector.shape_cast %90 : vector<64x128xf32> to vector<1x64x128xf32>
    tpu.vector_store %arg7[%c0_45, %c0_46, %c0_47], %93 {strides = array<i32>} : memref<1x64x128xf32, #tpu.memory_space<vmem>>, vector<1x64x128xf32>,
    return
  }
  func.func @transform_0(%arg0: i32) -> (i32, i32, i32) {
    %c0_i32 = arith.constant 0 : i32
    %c0_i32_0 = arith.constant 0 : i32
    %c0_i32_1 = arith.constant 0 : i32
    return %arg0, %c0_i32, %c0_i32_0 : i32, i32, i32
  }
  func.func @transform_1(%arg0: i32) -> (i32, i32, i32) {
    %c0_i32 = arith.constant 0 : i32
    %c0_i32_0 = arith.constant 0 : i32
    %c0_i32_1 = arith.constant 0 : i32
    return %arg0, %c0_i32, %c0_i32_0 : i32, i32, i32
  }
  func.func @transform_2(%arg0: i32) -> (i32, i32, i32) {
    %c0_i32 = arith.constant 0 : i32
    %c0_i32_0 = arith.constant 0 : i32
    %c0_i32_1 = arith.constant 0 : i32
    %c0_i32_2 = arith.constant 0 : i32
    return %c0_i32, %c0_i32_0, %c0_i32_1 : i32, i32, i32
  }
  func.func @transform_3(%arg0: i32) -> (i32, i32) {
    %c0_i32 = arith.constant 0 : i32
    %c0_i32_0 = arith.constant 0 : i32
    %c0_i32_1 = arith.constant 0 : i32
    return %c0_i32, %c0_i32_0 : i32, i32
  }
  func.func @transform_4(%arg0: i32) -> (i32, i32) {
    %c0_i32 = arith.constant 0 : i32
    %c0_i32_0 = arith.constant 0 : i32
    %c0_i32_1 = arith.constant 0 : i32
    return %c0_i32, %c0_i32_0 : i32, i32
  }
  func.func @transform_5(%arg0: i32) -> (i32, i32) {
    %c0_i32 = arith.constant 0 : i32
    %c0_i32_0 = arith.constant 0 : i32
    %c0_i32_1 = arith.constant 0 : i32
    return %c0_i32, %c0_i32_0 : i32, i32
  }
  func.func @transform_6(%arg0: i32) -> (i32, i32, i32) {
    %c0_i32 = arith.constant 0 : i32
    %c0_i32_0 = arith.constant 0 : i32
    %c0_i32_1 = arith.constant 0 : i32
    return %arg0, %c0_i32, %c0_i32_0 : i32, i32, i32
  }
}

</mosaic_0001>

<bundles_post_ra>
// kernel: gcn_forward.1
= control target key start
LH: loop header
LB: loop body
LE: loop exit
PB: predicated region body
PF: predicated region fallthrough
CT: control target
= control target key end

     0   :  { %s2279_s21 = smov 0   ;;  %s2627_s0 = inlined_call_operand.vmem [shape: bf16[4,64,32], index: 0, kind: input, shape index: {}]   ;;  %s2628_s1 = inlined_call_operand.vmem [shape: bf16[4,64,64], index: 1, kind: input, shape index: {}]   ;;  %s2629_s2 = inlined_call_operand.vmem [shape: bf16[6,32,32], index: 2, kind: input, shape index: {}]   ;;  %s2630_s3 = inlined_call_operand.vmem [shape: bf16[32,128], index: 3, kind: input, shape index: {}]   ;;  %s2631_s4 = inlined_call_operand.vmem [shape: f32[6,32], index: 4, kind: input, shape index: {}]   ;;  %s2632_s5 = inlined_call_operand.vmem [shape: f32[1,128], index: 5, kind: input, shape index: {}]   ;;  %s2633_s6 = inlined_call_operand.vmem [shape: f32[4,64,128], index: 6, kind: output, shape index: {}]  }
   0x1 LB: > { %s1765_s22 = sadd.s32 4294967295, %s2242_s21   ;;  %p1769_p0 = scmp.ge.s32.totalorder %s2242_s21, 1  ;;  %s2242_s21 = sphi %s2279_s21, %s16_s21  }
   0x2   : > { %p222_p1 = scmp.lt.s32.totalorder %s2242_s21, 5 }
   0x4   : > { %p223_p2 = pnand %p1769_p0, %p222_p1 }
   0x5   : > { %v2182_v0 = vld [vmem:[%s2629_s2] sm:$0xff] (!%p223_p2)   ;;  %p257_p3 = scmp.lt.s32.totalorder (!%p223_p2), %s1765_s22, 3  ;;  %v2183_v1 = vld [vmem:[%s2629_s2 + $0x8] sm:$0xff] (!%p223_p2)   ;;  %vm326_vm0 = vcmask (!%p223_p2), 261120   ;;  %vm432_vm1 = vcmask (!%p223_p2), 523264   ;;  %v2192_v7 = vld [vmem:[%s2629_s2 + $0x10] sm:$0xff] (!%p223_p2)   ;;  %v408_v24 = vlaneseq (!%p223_p2) }
   0x6   : > { %226 = sbr.rel (%p223_p2) target bundleno = 3532 (0xdcc), region = 44  ;;  %1978 = vmatprep.subr.bf16.mxu0 (!%p223_p2), %v2182_v0  ;;  %v2193_v23 = vld [vmem:[%s2629_s2 + $0x18] sm:$0xff] (!%p223_p2)   ;;  %v2342_v27 = vld [vmem:[%s2631_s4] sm:$0x3f] (!%p223_p2) }
   0x7   : > { %1979 = vmatpush3.bf16.msra.mxu0 (!%p223_p2), %v2182_v0  ;;  %v2336_v25 = vshrl.u32 (!%p223_p2), %v408_v24, 7  ;;  %v2194_v57 = vld [vmem:[%s2629_s2 + $0x20] sm:$0xff] (!%p223_p2)  }
   0x8   : > { %1980 = vmatprep.subr.bf16.mxu0 (!%p223_p2), %v2183_v1 }
   0x9   : > { %v410_v26 = vsub.s32 (!%p223_p2), 0, %v2336_v25 }
   0xb   : > { %1981 = vmatpush3.bf16.msra.mxu0 (!%p223_p2), %v2183_v1  ;;  %v411_v28 = vrot.slane (!%p223_p2), %v2342_v27, %v410_v26 }
   0xc   : > { %2006 = vmatprep.subr.bf16.mxu0 (!%p223_p2), %v2192_v7 }
   0xd   : > { %s2635_s22 = smov (!%p257_p3, %s1765_s22), 3 }
   0xe   : > { %s1877_s27 = sshll.u32 %s2635_s22, 5  ;;  %s1879_s16 = sshll.u32 %s2635_s22, 6 }
   0xf   : > { %s261_s30 = scalar_lea.vmem %s2627_s0, %s1877_s27  ;;  %s2303_s9 = scalar_lea.vmem %s2628_s1, %s1877_s27 }
  0x10   : > { %v2184_v2 = vld [vmem:[%s261_s30] sm:$0xff]   ;;  %v2185_v3 = vld [vmem:[%s261_s30 + $0x8] sm:$0xff]   ;;  %v2186_v4 = vld [vmem:[%s261_s30 + $0x10] sm:$0xff]   ;;  %s2606_s19 = scalar_lea.vmem %s2633_s6, %s1879_s16 }
  0x11   : > { %1982 = vmatprep.mubr.msk.bf16.mxu0 %vm326_vm0, %v2184_v2  ;;  %v2187_v5 = vld [vmem:[%s261_s30 + $0x18] sm:$0xff]   ;;  %v2309_v6 = vld [vmem:[%s2303_s9] sm:$0xff]   ;;  %v2317_v20 = vld [vmem:[%s2303_s9 + $0x8] sm:$0xff]  }
  0x12   : > { %1983 = vmatmul.mubr.msk.bf16.vlgmr.msra.gmra.mrb[0].mxu0 %vm326_vm0, %v2185_v3  ;;  %1998 = vmatprep.mubr.msk.bf16.mxu1 %vm432_vm1, %v2309_v6  ;;  %v2320_v21 = vld [vmem:[%s2303_s9 + $0x10] sm:$0xff]   ;;  %v2327_v22 = vld [vmem:[%s2303_s9 + $0x18] sm:$0xff]  }
  0x13   : > { %1986 = vmatprep.mubr.msk.bf16.mxu0 %vm326_vm0, %v2186_v4  ;;  %2007 = vmatpush3.bf16.msra.mxu0 %v2192_v7  ;;  %v2195_v7 = vld [vmem:[%s2629_s2 + $0x28] sm:$0xff]  }
  0x14   : > { %2008 = vmatprep.subr.bf16.mxu0 %v2193_v23 }
  0x17   : > { %2009 = vmatpush3.bf16.msra.mxu0 %v2193_v23 }
  0x18   : > { %2034 = vmatprep.subr.bf16.mxu0 %v2194_v57 }
  0x1a   : > { %1987 = vmatmul.mubr.msk.bf16.gmra.mrb[4].mxu0 %vm326_vm0, %v2187_v5 }
  0xe5   : > { %v1984_v8 = vpop.f32.mrb[0].mxu0 }
  0xe6   : > { %v373_v9 = vpop.f32.mrb[1].mxu0 }
  0xe7   : > { %v1985_v10 = vpop.f32.mrb[2].mxu0 }
  0xe8   : > { %v405_v11 = vpack.c.bf16 %v1985_v10, %v1984_v8  ;;  %v376_v12 = vpop.f32.mrb[3].mxu0  ;;  %v622_v8 = vsub.s32 1, %v2336_v25 }
  0xe9   : > { %v404_v13 = vpack.c.bf16 %v376_v12, %v373_v9 }
  0xea   : > { %v623_v9 = vrot.slane %v2342_v27, %v622_v8 }
  0xeb   : > { %1990 = vmatprep.subr.bf16.mxu1 %v404_v13 }
  0xec   : > { %1991 = vmatpush3.bf16.msra.mxu1 %v404_v13 }
  0xed   : > { %v1988_v14 = vpop.f32.mrb[4].mxu0  ;;  %1992 = vmatprep.subr.bf16.mxu1 %v405_v11 }
  0xee   : > { %v389_v15 = vpop.f32.mrb[5].mxu0 }
  0xef   : > { %v1989_v16 = vpop.f32.mrb[6].mxu0 }
  0xf0   : > { %v407_v17 = vpack.c.bf16 %v1989_v16, %v1988_v14  ;;  %v392_v18 = vpop.f32.mrb[7].mxu0  ;;  %1993 = vmatpush3.bf16.msra.mxu1 %v405_v11 }
  0xf1   : > { %v406_v19 = vpack.c.bf16 %v392_v18, %v389_v15 }
  0xf3   : > { %1994 = vmatprep.subr.bf16.mxu1 %v406_v19 }
  0xf4   : > { %1995 = vmatpush3.bf16.msra.mxu1 %v406_v19 }
  0xf5   : > { %1996 = vmatprep.subr.bf16.mxu1 %v407_v17 }
  0xf8   : > { %1997 = vmatpush3.bf16.msra.mxu1 %v407_v17 }
  0xfb   : > { %1999 = vmatmul.mubr.msk.bf16.vlgmr.msra.gmra.mrb[0].mxu1 %vm432_vm1, %v2317_v20 }
  0xfc   : > { %2002 = vmatprep.mubr.msk.bf16.mxu1 %vm432_vm1, %v2320_v21 }
 0x103   : > { %2003 = vmatmul.mubr.msk.bf16.gmra.mrb[4].mxu1 %vm432_vm1, %v2327_v22 }
 0x104   : > { %2026 = vmatprep.mubr.msk.bf16.mxu1 %vm432_vm1, %v2309_v6 }
 0x1ce   : > { %v2000_v29 = vpop.f32.mrb[0].mxu1 }
 0x1cf   : > { %v488_v30 = vadd.f32 %v2000_v29, %v411_v28  ;;  %v479_v31 = vpop.f32.mrb[1].mxu1 }
 0x1d0   : > { %v480_v32 = vadd.f32 %v479_v31, %v411_v28  ;;  %v2001_v33 = vpop.f32.mrb[2].mxu1 }
 0x1d1   : > { %v491_v34 = vadd.f32 %v2001_v33, %v411_v28  ;;  %v482_v35 = vpop.f32.mrb[3].mxu1  ;;  %v512_v37 = vmax.f32 %v488_v30, 0.0 }
 0x1d2   : > { %v483_v36 = vadd.f32 %v482_v35, %v411_v28  ;;  %v510_v39 = vmax.f32 %v480_v32, 0.0 }
 0x1d3   : > { %v513_v38 = vmax.f32 %v491_v34, 0.0 }
 0x1d4   : > { %v511_v40 = vmax.f32 %v483_v36, 0.0 }
 0x1d5   : > { %v524_v41 = vpack.c.bf16 %v513_v38, %v512_v37 }
 0x1d6   : > { %v523_v42 = vpack.c.bf16 %v511_v40, %v510_v39  ;;  %v2004_v43 = vpop.f32.mrb[4].mxu1 }
 0x1d7   : > { %v504_v44 = vadd.f32 %v2004_v43, %v411_v28  ;;  %v495_v45 = vpop.f32.mrb[5].mxu1  ;;  %v2196_v43 = vld [vmem:[%s2629_s2 + $0x30] sm:$0xff]  }
 0x1d8   : > { %v496_v46 = vadd.f32 %v495_v45, %v411_v28  ;;  %v2005_v47 = vpop.f32.mrb[6].mxu1  ;;  %2010 = vmatprep.mubr.msk.bf16.mxu0 %vm326_vm0, %v523_v42 }
 0x1d9   : > { %v507_v48 = vadd.f32 %v2005_v47, %v411_v28  ;;  %v498_v49 = vpop.f32.mrb[7].mxu1  ;;  %2011 = vmatmul.mubr.msk.bf16.vlgmr.msra.gmra.mrb[8].mxu0 %vm326_vm0, %v524_v41  ;;  %v516_v51 = vmax.f32 %v504_v44, 0.0 }
 0x1da   : > { %v499_v50 = vadd.f32 %v498_v49, %v411_v28  ;;  %v514_v53 = vmax.f32 %v496_v46, 0.0  ;;  %2035 = vmatpush3.bf16.msra.mxu0 %v2194_v57  ;;  %v801_v57 = vsub.s32 2, %v2336_v25 }
 0x1db   : > { %v517_v52 = vmax.f32 %v507_v48, 0.0  ;;  %2036 = vmatprep.subr.bf16.mxu0 %v2195_v7 }
 0x1dc   : > { %v515_v54 = vmax.f32 %v499_v50, 0.0 }
 0x1dd   : > { %v526_v55 = vpack.c.bf16 %v517_v52, %v516_v51 }
 0x1de   : > { %v525_v56 = vpack.c.bf16 %v515_v54, %v514_v53  ;;  %2037 = vmatpush3.bf16.msra.mxu0 %v2195_v7 }
 0x1df   : > { %2062 = vmatprep.subr.bf16.mxu0 %v2196_v43 }
 0x1e0   : > { %2014 = vmatprep.mubr.msk.bf16.mxu0 %vm326_vm0, %v525_v56  ;;  %v2197_v56 = vld [vmem:[%s2629_s2 + $0x38] sm:$0xff]  }
 0x1e1   : > { %2015 = vmatmul.mubr.msk.bf16.gmra.mrb[12].mxu0 %vm326_vm0, %v526_v55 }
 0x2ac   : > { %v2012_v58 = vpop.f32.mrb[8].mxu0 }
 0x2ad   : > { %v585_v59 = vpop.f32.mrb[9].mxu0 }
 0x2ae   : > { %v2013_v60 = vpop.f32.mrb[10].mxu0 }
 0x2af   : > { %v617_v61 = vpack.c.bf16 %v2013_v60, %v2012_v58  ;;  %v588_v62 = vpop.f32.mrb[11].mxu0  ;;  %v802_v58 = vrot.slane %v2342_v27, %v801_v57 }
 0x2b0   : > { %v616_v63 = vpack.c.bf16 %v588_v62, %v585_v59 }
 0x2b2   : > { %2018 = vmatprep.subr.bf16.mxu1 %v616_v63 }
 0x2b3   : > { %2019 = vmatpush3.bf16.msra.mxu1 %v616_v63 }
 0x2b4   : > { %v2016_v0 = vpop.f32.mrb[12].mxu0  ;;  %2020 = vmatprep.subr.bf16.mxu1 %v617_v61 }
 0x2b5   : > { %v601_v1 = vpop.f32.mrb[13].mxu0 }
 0x2b6   : > { %v2017_v2 = vpop.f32.mrb[14].mxu0 }
 0x2b7   : > { %v619_v3 = vpack.c.bf16 %v2017_v2, %v2016_v0  ;;  %v604_v4 = vpop.f32.mrb[15].mxu0  ;;  %2021 = vmatpush3.bf16.msra.mxu1 %v617_v61 }
 0x2b8   : > { %v618_v5 = vpack.c.bf16 %v604_v4, %v601_v1 }
 0x2ba   : > { %2022 = vmatprep.subr.bf16.mxu1 %v618_v5 }
 0x2bb   : > { %2023 = vmatpush3.bf16.msra.mxu1 %v618_v5 }
 0x2bc   : > { %2024 = vmatprep.subr.bf16.mxu1 %v619_v3 }
 0x2bf   : > { %2025 = vmatpush3.bf16.msra.mxu1 %v619_v3 }
 0x2c2   : > { %2027 = vmatmul.mubr.msk.bf16.vlgmr.msra.gmra.mrb[8].mxu1 %vm432_vm1, %v2317_v20 }
 0x2c3   : > { %2030 = vmatprep.mubr.msk.bf16.mxu1 %vm432_vm1, %v2320_v21 }
 0x2ca   : > { %2031 = vmatmul.mubr.msk.bf16.gmra.mrb[12].mxu1 %vm432_vm1, %v2327_v22 }
 0x2cb   : > { %2054 = vmatprep.mubr.msk.bf16.mxu1 %vm432_vm1, %v2309_v6 }
 0x395   : > { %v2028_v10 = vpop.f32.mrb[8].mxu1 }
 0x396   : > { %v658_v11 = vpop.f32.mrb[9].mxu1  ;;  %v2367_v14 = vadd.f32 %v2028_v10, %v623_v9 }
 0x397   : > { %v2365_v12 = vadd.f32 %v658_v11, %v623_v9  ;;  %v2029_v13 = vpop.f32.mrb[10].mxu1 }
 0x398   : > { %v2369_v15 = vadd.f32 %v2029_v13, %v623_v9  ;;  %v661_v16 = vpop.f32.mrb[11].mxu1  ;;  %v691_v24 = vmax.f32 %v2367_v14, 0.0 }
 0x399   : > { %v2371_v17 = vadd.f32 %v661_v16, %v623_v9  ;;  %v689_v19 = vmax.f32 %v2365_v12, 0.0 }
 0x39a   : > { %v692_v18 = vmax.f32 %v2369_v15, 0.0 }
 0x39b   : > { %v690_v23 = vmax.f32 %v2371_v17, 0.0 }
 0x39c   : > { %v703_v29 = vpack.c.bf16 %v692_v18, %v691_v24 }
 0x39d   : > { %v702_v26 = vpack.c.bf16 %v690_v23, %v689_v19  ;;  %v2032_v28 = vpop.f32.mrb[12].mxu1 }
 0x39e   : > { %v674_v30 = vpop.f32.mrb[13].mxu1  ;;  %v2388_v33 = vadd.f32 %v2032_v28, %v623_v9 }
 0x39f   : > { %v2385_v31 = vadd.f32 %v674_v30, %v623_v9  ;;  %v2033_v32 = vpop.f32.mrb[14].mxu1  ;;  %2038 = vmatprep.mubr.msk.bf16.mxu0 %vm326_vm0, %v702_v26 }
 0x3a0   : > { %v2390_v34 = vadd.f32 %v2033_v32, %v623_v9  ;;  %v677_v35 = vpop.f32.mrb[15].mxu1  ;;  %2039 = vmatmul.mubr.msk.bf16.vlgmr.msra.gmra.mrb[16].mxu0 %vm326_vm0, %v703_v29  ;;  %v695_v40 = vmax.f32 %v2388_v33, 0.0 }
 0x3a1   : > { %v2393_v36 = vadd.f32 %v677_v35, %v623_v9  ;;  %v693_v38 = vmax.f32 %v2385_v31, 0.0  ;;  %2063 = vmatpush3.bf16.msra.mxu0 %v2196_v43  ;;  %v2198_v31 = vld [vmem:[%s2629_s2 + $0x40] sm:$0xff]  }
 0x3a2   : > { %v696_v37 = vmax.f32 %v2390_v34, 0.0  ;;  %2064 = vmatprep.subr.bf16.mxu0 %v2197_v56 }
 0x3a3   : > { %v694_v39 = vmax.f32 %v2393_v36, 0.0 }
 0x3a4   : > { %v705_v42 = vpack.c.bf16 %v696_v37, %v695_v40 }
 0x3a5   : > { %v704_v41 = vpack.c.bf16 %v694_v39, %v693_v38  ;;  %2065 = vmatpush3.bf16.msra.mxu0 %v2197_v56 }
 0x3a6   : > { %2090 = vmatprep.subr.bf16.mxu0 %v2198_v31 }
 0x3a7   : > { %2042 = vmatprep.mubr.msk.bf16.mxu0 %vm326_vm0, %v704_v41 }
 0x3a8   : > { %2043 = vmatmul.mubr.msk.bf16.gmra.mrb[20].mxu0 %vm326_vm0, %v705_v42 }
 0x473   : > { %v2040_v44 = vpop.f32.mrb[16].mxu0 }
 0x474   : > { %v764_v45 = vpop.f32.mrb[17].mxu0 }
 0x475   : > { %v2041_v46 = vpop.f32.mrb[18].mxu0 }
 0x476   : > { %v796_v47 = vpack.c.bf16 %v2041_v46, %v2040_v44  ;;  %v767_v48 = vpop.f32.mrb[19].mxu0 }
 0x477   : > { %v795_v49 = vpack.c.bf16 %v767_v48, %v764_v45 }
 0x479   : > { %2046 = vmatprep.subr.bf16.mxu1 %v795_v49 }
 0x47a   : > { %2047 = vmatpush3.bf16.msra.mxu1 %v795_v49 }
 0x47b   : > { %v2044_v50 = vpop.f32.mrb[20].mxu0  ;;  %2048 = vmatprep.subr.bf16.mxu1 %v796_v47 }
 0x47c   : > { %v780_v51 = vpop.f32.mrb[21].mxu0 }
 0x47d   : > { %v2045_v52 = vpop.f32.mrb[22].mxu0 }
 0x47e   : > { %v798_v53 = vpack.c.bf16 %v2045_v52, %v2044_v50  ;;  %v783_v54 = vpop.f32.mrb[23].mxu0  ;;  %2049 = vmatpush3.bf16.msra.mxu1 %v796_v47  ;;  %v2199_v50 = vld [vmem:[%s2629_s2 + $0x48] sm:$0xff]  }
 0x47f   : > { %v797_v55 = vpack.c.bf16 %v783_v54, %v780_v51  ;;  %v988_v51 = vsub.s32 3, %v2336_v25 }
 0x481   : > { %2050 = vmatprep.subr.bf16.mxu1 %v797_v55  ;;  %v989_v52 = vrot.slane %v2342_v27, %v988_v51 }
 0x482   : > { %2051 = vmatpush3.bf16.msra.mxu1 %v797_v55 }
 0x483   : > { %2052 = vmatprep.subr.bf16.mxu1 %v798_v53 }
 0x486   : > { %2053 = vmatpush3.bf16.msra.mxu1 %v798_v53 }
 0x489   : > { %2055 = vmatmul.mubr.msk.bf16.vlgmr.msra.gmra.mrb[16].mxu1 %vm432_vm1, %v2317_v20 }
 0x48a   : > { %2058 = vmatprep.mubr.msk.bf16.mxu1 %vm432_vm1, %v2320_v21 }
 0x491   : > { %2059 = vmatmul.mubr.msk.bf16.gmra.mrb[20].mxu1 %vm432_vm1, %v2327_v22 }
 0x492   : > { %2082 = vmatprep.mubr.msk.bf16.mxu1 %vm432_vm1, %v2309_v6 }
 0x55c   : > { %v2056_v59 = vpop.f32.mrb[16].mxu1 }
 0x55d   : > { %v846_v60 = vadd.f32 %v2056_v59, %v802_v58  ;;  %v837_v61 = vpop.f32.mrb[17].mxu1 }
 0x55e   : > { %v838_v62 = vadd.f32 %v837_v61, %v802_v58  ;;  %v2057_v63 = vpop.f32.mrb[18].mxu1 }
 0x55f   : > { %v849_v0 = vadd.f32 %v2057_v63, %v802_v58  ;;  %v840_v1 = vpop.f32.mrb[19].mxu1  ;;  %v870_v4 = vmax.f32 %v846_v60, 0.0 }
 0x560   : > { %v868_v2 = vmax.f32 %v838_v62, 0.0  ;;  %v841_v3 = vadd.f32 %v840_v1, %v802_v58 }
 0x561   : > { %v871_v5 = vmax.f32 %v849_v0, 0.0  ;;  %v2439_v13 = vadd.f32 %v870_v4, %v691_v24 }
 0x562   : > { %v869_v7 = vmax.f32 %v841_v3, 0.0  ;;  %v2431_v9 = vadd.f32 %v868_v2, %v689_v19 }
 0x563   : > { %v2427_v8 = vadd.f32 %v871_v5, %v692_v18 }
 0x564   : > { %v2435_v10 = vadd.f32 %v869_v7, %v690_v23  ;;  %v2060_v11 = vpop.f32.mrb[20].mxu1 }
 0x565   : > { %v862_v16 = vadd.f32 %v2060_v11, %v802_v58  ;;  %v853_v26 = vpop.f32.mrb[21].mxu1  ;;  %v890_v12 = vpack.c.bf16 %v2427_v8, %v2439_v13 }
 0x566   : > { %v889_v15 = vpack.c.bf16 %v2435_v10, %v2431_v9  ;;  %v854_v18 = vadd.f32 %v853_v26, %v802_v58  ;;  %v2061_v28 = vpop.f32.mrb[22].mxu1 }
 0x567   : > { %v865_v19 = vadd.f32 %v2061_v28, %v802_v58  ;;  %v856_v29 = vpop.f32.mrb[23].mxu1  ;;  %v874_v30 = vmax.f32 %v862_v16, 0.0 }
 0x568   : > { %v872_v17 = vmax.f32 %v854_v18, 0.0  ;;  %v857_v23 = vadd.f32 %v856_v29, %v802_v58  ;;  %2066 = vmatprep.mubr.msk.bf16.mxu0 %vm326_vm0, %v889_v15 }
 0x569   : > { %v875_v14 = vmax.f32 %v865_v19, 0.0  ;;  %2067 = vmatmul.mubr.msk.bf16.vlgmr.msra.gmra.mrb[24].mxu0 %vm326_vm0, %v890_v12  ;;  %v2461_v42 = vadd.f32 %v874_v30, %v695_v40 }
 0x56a   : > { %v873_v24 = vmax.f32 %v857_v23, 0.0  ;;  %v2453_v35 = vadd.f32 %v872_v17, %v693_v38  ;;  %2091 = vmatpush3.bf16.msra.mxu0 %v2198_v31 }
 0x56b   : > { %v2449_v32 = vadd.f32 %v875_v14, %v696_v37  ;;  %2092 = vmatprep.subr.bf16.mxu0 %v2199_v50 }
 0x56c   : > { %v2457_v41 = vadd.f32 %v873_v24, %v694_v39 }
 0x56d   : > { %v892_v34 = vpack.c.bf16 %v2449_v32, %v2461_v42 }
 0x56e   : > { %v891_v43 = vpack.c.bf16 %v2457_v41, %v2453_v35  ;;  %2093 = vmatpush3.bf16.msra.mxu0 %v2199_v50 }
 0x570   : > { %2070 = vmatprep.mubr.msk.bf16.mxu0 %vm326_vm0, %v891_v43 }
 0x571   : > { %2071 = vmatmul.mubr.msk.bf16.gmra.mrb[28].mxu0 %vm326_vm0, %v892_v34 }
 0x63c   : > { %v2068_v36 = vpop.f32.mrb[24].mxu0 }
 0x63d   : > { %v951_v33 = vpop.f32.mrb[25].mxu0 }
 0x63e   : > { %v2069_v37 = vpop.f32.mrb[26].mxu0 }
 0x63f   : > { %v983_v38 = vpack.c.bf16 %v2069_v37, %v2068_v36  ;;  %v954_v39 = vpop.f32.mrb[27].mxu0 }
 0x640   : > { %v982_v40 = vpack.c.bf16 %v954_v39, %v951_v33 }
 0x642   : > { %2074 = vmatprep.subr.bf16.mxu1 %v982_v40 }
 0x643   : > { %2075 = vmatpush3.bf16.msra.mxu1 %v982_v40 }
 0x644   : > { %v2072_v44 = vpop.f32.mrb[28].mxu0  ;;  %2076 = vmatprep.subr.bf16.mxu1 %v983_v38 }
 0x645   : > { %v967_v45 = vpop.f32.mrb[29].mxu0 }
 0x646   : > { %v2073_v46 = vpop.f32.mrb[30].mxu0 }
 0x647   : > { %v985_v47 = vpack.c.bf16 %v2073_v46, %v2072_v44  ;;  %v970_v48 = vpop.f32.mrb[31].mxu0  ;;  %2077 = vmatpush3.bf16.msra.mxu1 %v983_v38  ;;  %v2201_v44 = vld [vmem:[%s2629_s2 + $0x58] sm:$0xff]  }
 0x648   : > { %v984_v49 = vpack.c.bf16 %v970_v48, %v967_v45  ;;  %v1175_v45 = vsub.s32 4, %v2336_v25 }
 0x64a   : > { %2078 = vmatprep.subr.bf16.mxu1 %v984_v49  ;;  %v1176_v46 = vrot.slane %v2342_v27, %v1175_v45 }
 0x64b   : > { %2079 = vmatpush3.bf16.msra.mxu1 %v984_v49 }
 0x64c   : > { %2080 = vmatprep.subr.bf16.mxu1 %v985_v47 }
 0x64f   : > { %2081 = vmatpush3.bf16.msra.mxu1 %v985_v47 }
 0x652   : > { %2083 = vmatmul.mubr.msk.bf16.vlgmr.msra.gmra.mrb[24].mxu1 %vm432_vm1, %v2317_v20 }
 0x653   : > { %2086 = vmatprep.mubr.msk.bf16.mxu1 %vm432_vm1, %v2320_v21 }
 0x65a   : > { %2087 = vmatmul.mubr.msk.bf16.gmra.mrb[28].mxu1 %vm432_vm1, %v2327_v22 }
 0x65b   : > { %2110 = vmatprep.mubr.msk.bf16.mxu1 %vm432_vm1, %v2309_v6 }
 0x725   : > { %v2084_v53 = vpop.f32.mrb[24].mxu1 }
 0x726   : > { %v1033_v54 = vadd.f32 %v2084_v53, %v989_v52  ;;  %v1024_v55 = vpop.f32.mrb[25].mxu1 }
 0x727   : > { %v1025_v56 = vadd.f32 %v1024_v55, %v989_v52  ;;  %v2085_v57 = vpop.f32.mrb[26].mxu1 }
 0x728   : > { %v1036_v58 = vadd.f32 %v2085_v57, %v989_v52  ;;  %v1027_v59 = vpop.f32.mrb[27].mxu1  ;;  %v1057_v62 = vmax.f32 %v1033_v54, 0.0 }
 0x729   : > { %v1055_v60 = vmax.f32 %v1025_v56, 0.0  ;;  %v1028_v61 = vadd.f32 %v1027_v59, %v989_v52 }
 0x72a   : > { %v1058_v63 = vmax.f32 %v1036_v58, 0.0  ;;  %v2495_v5 = vadd.f32 %v1057_v62, %v2439_v13 }
 0x72b   : > { %v1056_v0 = vmax.f32 %v1028_v61, 0.0  ;;  %v2489_v2 = vadd.f32 %v1055_v60, %v2431_v9 }
 0x72c   : > { %v2486_v1 = vadd.f32 %v1058_v63, %v2427_v8 }
 0x72d   : > { %v2492_v3 = vadd.f32 %v1056_v0, %v2435_v10  ;;  %v2088_v4 = vpop.f32.mrb[28].mxu1 }
 0x72e   : > { %v1049_v7 = vadd.f32 %v2088_v4, %v989_v52  ;;  %v1040_v11 = vpop.f32.mrb[29].mxu1  ;;  %v1077_v8 = vpack.c.bf16 %v2486_v1, %v2495_v5 }
 0x72f   : > { %v1076_v16 = vpack.c.bf16 %v2492_v3, %v2489_v2  ;;  %v1041_v26 = vadd.f32 %v1040_v11, %v989_v52  ;;  %v2089_v15 = vpop.f32.mrb[30].mxu1 }
 0x730   : > { %v1052_v18 = vadd.f32 %v2089_v15, %v989_v52  ;;  %v1043_v9 = vpop.f32.mrb[31].mxu1  ;;  %v1061_v10 = vmax.f32 %v1049_v7, 0.0 }
 0x731   : > { %v1059_v28 = vmax.f32 %v1041_v26, 0.0  ;;  %v1044_v12 = vadd.f32 %v1043_v9, %v989_v52  ;;  %2094 = vmatprep.mubr.msk.bf16.mxu0 %vm326_vm0, %v1076_v16 }
 0x732   : > { %v1062_v19 = vmax.f32 %v1052_v18, 0.0  ;;  %2095 = vmatmul.mubr.msk.bf16.vlgmr.msra.gmra.mrb[32].mxu0 %vm326_vm0, %v1077_v8  ;;  %v2513_v30 = vadd.f32 %v1061_v10, %v2461_v42 }
 0x733   : > { %v1060_v13 = vmax.f32 %v1044_v12, 0.0  ;;  %v2507_v17 = vadd.f32 %v1059_v28, %v2453_v35 }
 0x734   : > { %v2504_v29 = vadd.f32 %v1062_v19, %v2449_v32  ;;  %v2200_v32 = vld [vmem:[%s2629_s2 + $0x50] sm:$0xff]  }
 0x735   : > { %v2510_v23 = vadd.f32 %v1060_v13, %v2457_v41  ;;  %2118 = vmatprep.subr.bf16.mxu0 %v2200_v32 }
 0x736   : > { %v1079_v24 = vpack.c.bf16 %v2504_v29, %v2513_v30  ;;  %2119 = vmatpush3.bf16.msra.mxu0 %v2200_v32 }
 0x737   : > { %v1078_v14 = vpack.c.bf16 %v2510_v23, %v2507_v17  ;;  %2120 = vmatprep.subr.bf16.mxu0 %v2201_v44 }
 0x739   : > { %2098 = vmatprep.mubr.msk.bf16.mxu0 %vm326_vm0, %v1078_v14 }
 0x73a   : > { %2099 = vmatmul.mubr.msk.bf16.gmra.mrb[36].mxu0 %vm326_vm0, %v1079_v24 }
 0x73b   : > { %2121 = vmatpush3.bf16.msra.mxu0 %v2201_v44 }
 0x805   : > { %v2096_v35 = vpop.f32.mrb[32].mxu0 }
 0x806   : > { %v1138_v41 = vpop.f32.mrb[33].mxu0 }
 0x807   : > { %v2097_v42 = vpop.f32.mrb[34].mxu0 }
 0x808   : > { %v1170_v43 = vpack.c.bf16 %v2097_v42, %v2096_v35  ;;  %v1141_v34 = vpop.f32.mrb[35].mxu0 }
 0x809   : > { %v1169_v31 = vpack.c.bf16 %v1141_v34, %v1138_v41 }
 0x80b   : > { %2102 = vmatprep.subr.bf16.mxu1 %v1169_v31 }
 0x80c   : > { %2103 = vmatpush3.bf16.msra.mxu1 %v1169_v31  ;;  %v2203_v31 = vld [vmem:[%s2630_s3 + $0x8] sm:$0xff]  }
 0x80d   : > { %v2100_v36 = vpop.f32.mrb[36].mxu0  ;;  %2104 = vmatprep.subr.bf16.mxu1 %v1170_v43 }
 0x80e   : > { %v1154_v33 = vpop.f32.mrb[37].mxu0 }
 0x80f   : > { %v2101_v37 = vpop.f32.mrb[38].mxu0 }
 0x810   : > { %v1172_v38 = vpack.c.bf16 %v2101_v37, %v2100_v36  ;;  %v1157_v39 = vpop.f32.mrb[39].mxu0  ;;  %2105 = vmatpush3.bf16.msra.mxu1 %v1170_v43  ;;  %v1362_v36 = vsub.s32 5, %v2336_v25 }
 0x811   : > { %v1171_v40 = vpack.c.bf16 %v1157_v39, %v1154_v33 }
 0x812   : > { %v1363_v33 = vrot.slane %v2342_v27, %v1362_v36 }
 0x813   : > { %2106 = vmatprep.subr.bf16.mxu1 %v1171_v40 }
 0x814   : > { %2107 = vmatpush3.bf16.msra.mxu1 %v1171_v40 }
 0x815   : > { %2108 = vmatprep.subr.bf16.mxu1 %v1172_v38 }
 0x818   : > { %2109 = vmatpush3.bf16.msra.mxu1 %v1172_v38 }
 0x81b   : > { %2111 = vmatmul.mubr.msk.bf16.vlgmr.msra.gmra.mrb[32].mxu1 %vm432_vm1, %v2317_v20 }
 0x81c   : > { %2114 = vmatprep.mubr.msk.bf16.mxu1 %vm432_vm1, %v2320_v21 }
 0x823   : > { %2115 = vmatmul.mubr.msk.bf16.gmra.mrb[36].mxu1 %vm432_vm1, %v2327_v22 }
 0x824   : > { %2138 = vmatprep.mubr.msk.bf16.mxu1 %vm432_vm1, %v2309_v6 }
 0x8ee   : > { %v2112_v47 = vpop.f32.mrb[32].mxu1 }
 0x8ef   : > { %v1220_v48 = vadd.f32 %v2112_v47, %v1176_v46  ;;  %v1211_v49 = vpop.f32.mrb[33].mxu1 }
 0x8f0   : > { %v1212_v50 = vadd.f32 %v1211_v49, %v1176_v46  ;;  %v2113_v51 = vpop.f32.mrb[34].mxu1 }
 0x8f1   : > { %v1244_v52 = vmax.f32 %v1220_v48, 0.0  ;;  %v1223_v53 = vadd.f32 %v2113_v51, %v1176_v46  ;;  %v1214_v54 = vpop.f32.mrb[35].mxu1 }
 0x8f2   : > { %v1242_v55 = vmax.f32 %v1212_v50, 0.0  ;;  %v1215_v56 = vadd.f32 %v1214_v54, %v1176_v46 }
 0x8f3   : > { %v1245_v57 = vmax.f32 %v1223_v53, 0.0  ;;  %v1252_v59 = vadd.f32 %v1244_v52, %v2495_v5 }
 0x8f4   : > { %v1243_v58 = vmax.f32 %v1215_v56, 0.0  ;;  %v1250_v61 = vadd.f32 %v1242_v55, %v2489_v2 }
 0x8f5   : > { %v1253_v60 = vadd.f32 %v1245_v57, %v2486_v1 }
 0x8f6   : > { %v1251_v62 = vadd.f32 %v1243_v58, %v2492_v3  ;;  %v2116_v63 = vpop.f32.mrb[36].mxu1 }
 0x8f7   : > { %v1264_v0 = vpack.c.bf16 %v1253_v60, %v1252_v59  ;;  %v1236_v4 = vadd.f32 %v2116_v63, %v1176_v46  ;;  %v1227_v7 = vpop.f32.mrb[37].mxu1 }
 0x8f8   : > { %v1263_v11 = vpack.c.bf16 %v1251_v62, %v1250_v61  ;;  %v1228_v16 = vadd.f32 %v1227_v7, %v1176_v46  ;;  %v2117_v26 = vpop.f32.mrb[38].mxu1 }
 0x8f9   : > { %v1248_v15 = vmax.f32 %v1236_v4, 0.0  ;;  %v1239_v8 = vadd.f32 %v2117_v26, %v1176_v46  ;;  %v1230_v18 = vpop.f32.mrb[39].mxu1 }
 0x8fa   : > { %v1246_v9 = vmax.f32 %v1228_v16, 0.0  ;;  %v1231_v28 = vadd.f32 %v1230_v18, %v1176_v46  ;;  %2122 = vmatprep.mubr.msk.bf16.mxu0 %vm326_vm0, %v1263_v11 }
 0x8fb   : > { %v1249_v5 = vmax.f32 %v1239_v8, 0.0  ;;  %2123 = vmatmul.mubr.msk.bf16.vlgmr.msra.gmra.mrb[40].mxu0 %vm326_vm0, %v1264_v0  ;;  %v1256_v2 = vadd.f32 %v1248_v15, %v2513_v30 }
 0x8fc   : > { %v1247_v1 = vmax.f32 %v1231_v28, 0.0  ;;  %v1254_v12 = vadd.f32 %v1246_v9, %v2507_v17 }
 0x8fd   : > { %v1257_v3 = vadd.f32 %v1249_v5, %v2504_v29 }
 0x8fe   : > { %v1255_v10 = vadd.f32 %v1247_v1, %v2510_v23 }
 0x8ff   : > { %v1266_v19 = vpack.c.bf16 %v1257_v3, %v1256_v2 }
 0x900   : > { %v1265_v13 = vpack.c.bf16 %v1255_v10, %v1254_v12 }
 0x902   : > { %2126 = vmatprep.mubr.msk.bf16.mxu0 %vm326_vm0, %v1265_v13 }
 0x903   : > { %2127 = vmatmul.mubr.msk.bf16.gmra.mrb[44].mxu0 %vm326_vm0, %v1266_v19 }
 0x904   : > { %2154 = vmatprep.mubr.msk.bf16.mxu0 %vm432_vm1, %v2309_v6  ;;  %v2202_v6 = vld [vmem:[%s2630_s3] sm:$0xff]  }
 0x9ce   : > { %v2124_v14 = vpop.f32.mrb[40].mxu0 }
 0x9cf   : > { %v1325_v24 = vpop.f32.mrb[41].mxu0 }
 0x9d0   : > { %v2125_v32 = vpop.f32.mrb[42].mxu0 }
 0x9d1   : > { %v1357_v35 = vpack.c.bf16 %v2125_v32, %v2124_v14  ;;  %v1328_v30 = vpop.f32.mrb[43].mxu0 }
 0x9d2   : > { %v1356_v41 = vpack.c.bf16 %v1328_v30, %v1325_v24 }
 0x9d4   : > { %2130 = vmatprep.subr.bf16.mxu1 %v1356_v41 }
 0x9d5   : > { %2131 = vmatpush3.bf16.msra.mxu1 %v1356_v41 }
 0x9d6   : > { %v2128_v29 = vpop.f32.mrb[44].mxu0  ;;  %2132 = vmatprep.subr.bf16.mxu1 %v1357_v35 }
 0x9d7   : > { %v1341_v17 = vpop.f32.mrb[45].mxu0 }
 0x9d8   : > { %v2129_v23 = vpop.f32.mrb[46].mxu0 }
 0x9d9   : > { %v1359_v42 = vpack.c.bf16 %v2129_v23, %v2128_v29  ;;  %v1344_v43 = vpop.f32.mrb[47].mxu0  ;;  %2133 = vmatpush3.bf16.msra.mxu1 %v1357_v35 }
 0x9da   : > { %v1358_v34 = vpack.c.bf16 %v1344_v43, %v1341_v17 }
 0x9dc   : > { %2134 = vmatprep.subr.bf16.mxu1 %v1358_v34 }
 0x9dd   : > { %2135 = vmatpush3.bf16.msra.mxu1 %v1358_v34 }
 0x9de   : > { %2136 = vmatprep.subr.bf16.mxu1 %v1359_v42 }
 0x9e1   : > { %2137 = vmatpush3.bf16.msra.mxu1 %v1359_v42 }
 0x9e2   : > { %2162 = vmatprep.subr.bf16.mxu1 %v2202_v6 }
 0x9e4   : > { %2139 = vmatmul.mubr.msk.bf16.vlgmr.msra.gmra.mrb[40].mxu1 %vm432_vm1, %v2317_v20 }
 0x9e5   : > { %2142 = vmatprep.mubr.msk.bf16.mxu1 %vm432_vm1, %v2320_v21  ;;  %2163 = vmatpush3.bf16.msra.mxu1 %v2202_v6 }
 0x9e6   : > { %2164 = vmatprep.subr.bf16.mxu1 %v2203_v31 }
 0x9e9   : > { %2165 = vmatpush3.bf16.msra.mxu1 %v2203_v31 }
 0x9ec   : > { %2143 = vmatmul.mubr.msk.bf16.gmra.mrb[44].mxu1 %vm432_vm1, %v2327_v22 }
 0xab7   : > { %v2140_v37 = vpop.f32.mrb[40].mxu1 }
 0xab8   : > { %v1407_v38 = vadd.f32 %v2140_v37, %v1363_v33  ;;  %v1398_v39 = vpop.f32.mrb[41].mxu1 }
 0xab9   : > { %v1399_v40 = vadd.f32 %v1398_v39, %v1363_v33  ;;  %v2141_v44 = vpop.f32.mrb[42].mxu1 }
 0xaba   : > { %v1410_v45 = vadd.f32 %v2141_v44, %v1363_v33  ;;  %v1401_v46 = vpop.f32.mrb[43].mxu1  ;;  %v1431_v48 = vmax.f32 %v1407_v38, 0.0 }
 0xabb   : > { %v1402_v47 = vadd.f32 %v1401_v46, %v1363_v33  ;;  %v1429_v50 = vmax.f32 %v1399_v40, 0.0 }
 0xabc   : > { %v1432_v49 = vmax.f32 %v1410_v45, 0.0 }
 0xabd   : > { %v1430_v51 = vmax.f32 %v1402_v47, 0.0 }
 0xabe   : > { %v1438_v52 = vpack.c.bf16 %v1432_v49, %v1431_v48 }
 0xabf   : > { %v1437_v53 = vpack.c.bf16 %v1430_v51, %v1429_v50  ;;  %v2144_v54 = vpop.f32.mrb[44].mxu1 }
 0xac0   : > { %v1423_v55 = vadd.f32 %v2144_v54, %v1363_v33  ;;  %v1414_v56 = vpop.f32.mrb[45].mxu1 }
 0xac1   : > { %v1415_v25 = vadd.f32 %v1414_v56, %v1363_v33  ;;  %v2145_v57 = vpop.f32.mrb[46].mxu1  ;;  %2146 = vmatprep.subr.bf16.mxu0 %v1437_v53 }
 0xac2   : > { %v1426_v27 = vadd.f32 %v2145_v57, %v1363_v33  ;;  %v1417_v58 = vpop.f32.mrb[47].mxu1  ;;  %2147 = vmatpush3.bf16.msra.mxu0 %v1437_v53  ;;  %v1435_v60 = vmax.f32 %v1423_v55, 0.0 }
 0xac3   : > { %v1418_v59 = vadd.f32 %v1417_v58, %v1363_v33  ;;  %2148 = vmatprep.subr.bf16.mxu0 %v1438_v52  ;;  %v1433_v62 = vmax.f32 %v1415_v25, 0.0 }
 0xac4   : > { %v1436_v61 = vmax.f32 %v1426_v27, 0.0 }
 0xac5   : > { %v1434_v63 = vmax.f32 %v1418_v59, 0.0 }
 0xac6   : > { %v1440_v0 = vpack.c.bf16 %v1436_v61, %v1435_v60  ;;  %2149 = vmatpush3.bf16.msra.mxu0 %v1438_v52 }
 0xac7   : > { %v1439_v4 = vpack.c.bf16 %v1434_v63, %v1433_v62 }
 0xac9   : > { %2150 = vmatprep.subr.bf16.mxu0 %v1439_v4 }
 0xaca   : > { %2151 = vmatpush3.bf16.msra.mxu0 %v1439_v4 }
 0xacb   : > { %2152 = vmatprep.subr.bf16.mxu0 %v1440_v0 }
 0xace   : > { %2153 = vmatpush3.bf16.msra.mxu0 %v1440_v0 }
 0xad1   : > { %2155 = vmatmul.mubr.msk.bf16.vlgmr.msra.gmra.mrb[48].mxu0 %vm432_vm1, %v2317_v20 }
 0xad2   : > { %2158 = vmatprep.mubr.msk.bf16.mxu0 %vm432_vm1, %v2320_v21  ;;  %v1868_v21 = vld [vmem:[%s2632_s5] ss:$0 sm:$0xff] }
 0xad9   : > { %2159 = vmatmul.mubr.msk.bf16.gmra.mrb[52].mxu0 %vm432_vm1, %v2327_v22 }
 0xba4   : > { %v2156_v7 = vpop.f32.mrb[48].mxu0 }
 0xba5   : > { %v1475_v11 = vpop.f32.mrb[49].mxu0 }
 0xba6   : > { %v2157_v16 = vpop.f32.mrb[50].mxu0 }
 0xba7   : > { %v1507_v26 = vpack.c.bf16 %v2157_v16, %v2156_v7  ;;  %v1478_v15 = vpop.f32.mrb[51].mxu0 }
 0xba8   : > { %v1506_v8 = vpack.c.bf16 %v1478_v15, %v1475_v11 }
 0xbaa   : > { %2166 = vmatprep.mubr.msk.bf16.mxu1 %vm326_vm0, %v1506_v8 }
 0xbab   : > { %2167 = vmatmul.mubr.msk.bf16.vlgmr.msra.gmra.mrb[48].mxu1 %vm326_vm0, %v1507_v26 }
 0xbac   : > { %v2160_v18 = vpop.f32.mrb[52].mxu0 }
 0xbad   : > { %v1491_v9 = vpop.f32.mrb[53].mxu0 }
 0xbae   : > { %v2161_v28 = vpop.f32.mrb[54].mxu0 }
 0xbaf   : > { %v1509_v20 = vpack.c.bf16 %v2161_v28, %v2160_v18  ;;  %v1494_v5 = vpop.f32.mrb[55].mxu0 }
 0xbb0   : > { %v1508_v1 = vpack.c.bf16 %v1494_v5, %v1491_v9 }
 0xbb2   : > { %2170 = vmatprep.mubr.msk.bf16.mxu1 %vm326_vm0, %v1508_v1 }
 0xbb3   : > { %2171 = vmatmul.mubr.msk.bf16.gmra.mrb[52].mxu1 %vm326_vm0, %v1509_v20 }
 0xc7e   : > { %v2168_v22 = vpop.f32.mrb[48].mxu1 }
 0xc7f   : > { %v1588_v2 = vadd.f32 %v2168_v22, %v1868_v21  ;;  %v1579_v3 = vpop.f32.mrb[49].mxu1 }
 0xc80   : > { %v1580_v12 = vadd.f32 %v1868_v21, %v1579_v3  ;;  %v2169_v10 = vpop.f32.mrb[50].mxu1 }
 0xc81   : > { %1614 = vmax.xlane.f32.xlu1 %v1588_v2  ;;  %v1582_v19 = vpop.f32.mrb[51].mxu1  ;;  %v1591_v13 = vadd.f32 %v2169_v10, %v1868_v21 }
 0xc82   : > { %1610 = vmax.xlane.f32.xlu0 %v1580_v12  ;;  %v1583_v14 = vadd.f32 %v1868_v21, %v1582_v19 }
 0xc85   : > { %1616 = vmax.xlane.f32.xlu1 %v1591_v13 }
 0xc86   : > { %1612 = vmax.xlane.f32.xlu0 %v1583_v14  ;;  %v2172_v24 = vpop.f32.mrb[52].mxu1 }
 0xc87   : > { %v1595_v32 = vpop.f32.mrb[53].mxu1  ;;  %v1604_v17 = vadd.f32 %v2172_v24, %v1868_v21 }
 0xc88   : > { %v1596_v35 = vadd.f32 %v1868_v21, %v1595_v32  ;;  %v2173_v30 = vpop.f32.mrb[54].mxu1 }
 0xc89   : > { %v1598_v41 = vpop.f32.mrb[55].mxu1  ;;  %v1607_v23 = vadd.f32 %v2173_v30, %v1868_v21 }
 0xc8a   : > { %v1599_v29 = vadd.f32 %v1868_v21, %v1598_v41  ;;  %1618 = vmax.xlane.f32.xlu0 %v1596_v35 }
 0xc8c   : > { %1620 = vmax.xlane.f32.xlu1 %v1599_v29 }
 0xc8e   : > { %1622 = vmax.xlane.f32.xlu0 %v1604_v17 }
 0xc90   : > { %1624 = vmax.xlane.f32.xlu1 %v1607_v23 }
 0xd0e   : > { %v1615_v42 = vpop.xlane.xlu1 %1614 }
 0xd0f   : > { %v2578_v43 = vsub.f32 %v1588_v2, %v1615_v42  ;;  %v1611_v34 = vpop.xlane.xlu0 %1610 }
 0xd10   : > { %v2580_v6 = vsub.f32 %v1580_v12, %v1611_v34 }
 0xd11   : > { %v1638_v31 = vmul.f32 1.442695, %v2578_v43 }
 0xd12   : > { %v1634_v36 = vmul.f32 1.442695, %v2580_v6  ;;  %v1617_v33 = vpop.xlane.xlu1 %1616 }
 0xd13   : > { %2204 = vpow2.f32 %v1638_v31  ;;  %v2584_v37 = vsub.f32 %v1591_v13, %v1617_v33  ;;  %v1613_v38 = vpop.xlane.xlu0 %1612 }
 0xd14   : > { %v2586_v39 = vsub.f32 %v1583_v14, %v1613_v38  ;;  %2206 = vpow2.f32 %v1634_v36 }
 0xd15   : > { %v1640_v40 = vmul.f32 1.442695, %v2584_v37 }
 0xd16   : > { %v1636_v44 = vmul.f32 1.442695, %v2586_v39 }
 0xd17   : > { %2208 = vpow2.f32 %v1640_v40  ;;  %v1619_v45 = vpop.xlane.xlu0 %1618 }
 0xd18   : > { %v2590_v46 = vsub.f32 %v1596_v35, %v1619_v45  ;;  %2210 = vpow2.f32 %v1636_v44 }
 0xd19   : > { %v1621_v47 = vpop.xlane.xlu1 %1620 }
 0xd1a   : > { %v1642_v48 = vmul.f32 1.442695, %v2590_v46  ;;  %v2593_v49 = vsub.f32 %v1599_v29, %v1621_v47 }
 0xd1b   : > { %v1623_v50 = vpop.xlane.xlu0 %1622 }
 0xd1c   : > { %2212 = vpow2.f32 %v1642_v48  ;;  %v1644_v51 = vmul.f32 1.442695, %v2593_v49  ;;  %v2596_v52 = vsub.f32 %v1604_v17, %v1623_v50 }
 0xd1d   : > { %v2205_v53 = vpop.eup %2204  ;;  %v1625_v54 = vpop.xlane.xlu1 %1624 }
 0xd1e   : > { %2214 = vpow2.f32 %v1644_v51  ;;  %v1646_v55 = vmul.f32 1.442695, %v2596_v52  ;;  %v2599_v56 = vsub.f32 %v1607_v23, %v1625_v54  ;;  %1654 = vadd.xlane.f32.xlu0 %v2205_v53  ;;  %v2207_v25 = vpop.eup %2206 }
 0xd20   : > { %2216 = vpow2.f32 %v1646_v55  ;;  %v1648_v57 = vmul.f32 1.442695, %v2599_v56 }
 0xd21   : > { %v2209_v27 = vpop.eup %2208 }
 0xd22   : > { %2218 = vpow2.f32 %v1648_v57  ;;  %1656 = vadd.xlane.f32.xlu1 %v2209_v27  ;;  %1650 = vadd.xlane.f32.xlu0 %v2207_v25  ;;  %v2211_v58 = vpop.eup %2210 }
 0xd26   : > { %v2213_v59 = vpop.eup %2212  ;;  %1652 = vadd.xlane.f32.xlu1 %v2211_v58 }
 0xd27   : > { %1658 = vadd.xlane.f32.xlu0 %v2213_v59 }
 0xd28   : > { %v2215_v60 = vpop.eup %2214 }
 0xd2a   : > { %v2217_v61 = vpop.eup %2216  ;;  %1660 = vadd.xlane.f32.xlu1 %v2215_v60 }
 0xd2b   : > { %1662 = vadd.xlane.f32.xlu0 %v2217_v61 }
 0xd2c   : > { %v2219_v62 = vpop.eup %2218 }
 0xd2e   : > { %1664 = vadd.xlane.f32.xlu1 %v2219_v62 }
 0xdab   : > { %v1655_v63 = vpop.xlane.xlu0 %1654 }
 0xdac   : > { %2220 = vlog2.f32 %v1655_v63 }
 0xdaf   : > { %v1657_v0 = vpop.xlane.xlu1 %1656  ;;  %v1651_v4 = vpop.xlane.xlu0 %1650 }
 0xdb0   : > { %2222 = vlog2.f32 %v1657_v0 }
 0xdb1   : > { %2224 = vlog2.f32 %v1651_v4 }
 0xdb3   : > { %v1653_v7 = vpop.xlane.xlu1 %1652 }
 0xdb4   : > { %2226 = vlog2.f32 %v1653_v7  ;;  %v1659_v11 = vpop.xlane.xlu0 %1658 }
 0xdb5   : > { %2228 = vlog2.f32 %v1659_v11 }
 0xdb6   : > { %v2221_v16 = vpop.eup %2220 }
 0xdb7   : > { %v1671_v26 = vmul.f32 0.6931472, %v2221_v16  ;;  %v1661_v15 = vpop.xlane.xlu1 %1660 }
 0xdb8   : > { %2230 = vlog2.f32 %v1661_v15  ;;  %v1663_v8 = vpop.xlane.xlu0 %1662 }
 0xdb9   : > { %v1684_v18 = vsub.f32 %v2578_v43, %v1671_v26  ;;  %2232 = vlog2.f32 %v1663_v8 }
 0xdba   : > { %v2223_v9 = vpop.eup %2222 }
 0xdbb   : > { %v2225_v28 = vpop.eup %2224  ;;  %1692 = vst [vmem:[%s2606_s19 + $0x10] sm:$0xff] %v1684_v18  ;;  %v1673_v20 = vmul.f32 0.6931472, %v2223_v9  ;;  %v1665_v5 = vpop.xlane.xlu1 %1664 }
 0xdbc   : > { %v1667_v1 = vmul.f32 0.6931472, %v2225_v28  ;;  %2234 = vlog2.f32 %v1665_v5 }
 0xdbd   : > { %v1685_v21 = vsub.f32 %v2584_v37, %v1673_v20 }
 0xdbe   : > { %v2227_v22 = vpop.eup %2226  ;;  %v1682_v2 = vsub.f32 %v2580_v6, %v1667_v1 }
 0xdbf   : > { %v2229_v3 = vpop.eup %2228  ;;  %1693 = vst [vmem:[%s2606_s19 + $0x18] sm:$0xff] %v1685_v21  ;;  %v1669_v12 = vmul.f32 0.6931472, %v2227_v22 }
 0xdc0   : > { %1690 = vst [vmem:[%s2606_s19] sm:$0xff] %v1682_v2  ;;  %v1675_v10 = vmul.f32 0.6931472, %v2229_v3 }
 0xdc1   : > { %v1683_v19 = vsub.f32 %v2586_v39, %v1669_v12 }
 0xdc2   : > { %v2231_v13 = vpop.eup %2230  ;;  %v1686_v14 = vsub.f32 %v2590_v46, %v1675_v10 }
 0xdc3   : > { %v2233_v24 = vpop.eup %2232  ;;  %1691 = vst [vmem:[%s2606_s19 + $0x8] sm:$0xff] %v1683_v19  ;;  %v1677_v32 = vmul.f32 0.6931472, %v2231_v13 }
 0xdc4   : > { %1694 = vst [vmem:[%s2606_s19 + $0x20] sm:$0xff] %v1686_v14  ;;  %v1679_v35 = vmul.f32 0.6931472, %v2233_v24 }
 0xdc5   : > { %v1687_v30 = vsub.f32 %v2593_v49, %v1677_v32 }
 0xdc6   : > { %v2235_v41 = vpop.eup %2234  ;;  %v1688_v29 = vsub.f32 %v2596_v52, %v1679_v35 }
 0xdc7   : > { %1695 = vst [vmem:[%s2606_s19 + $0x28] sm:$0xff] %v1687_v30  ;;  %v1681_v17 = vmul.f32 0.6931472, %v2235_v41 }
 0xdc8   : > { %1696 = vst [vmem:[%s2606_s19 + $0x30] sm:$0xff] %v1688_v29 }
 0xdc9   : > { %v1689_v23 = vsub.f32 %v2599_v56, %v1681_v17 }
 0xdcb   : > { %1697 = vst [vmem:[%s2606_s19 + $0x38] sm:$0xff] %v1689_v23 }
 0xdcc PF: > { %s16_s21 = sadd.s32 1, %s2242_s21  }
 0xdcd   : > { %p13_p4 = scmp.ge.s32.totalorder %s16_s21, 6  }
 0xdcf   :  { %15 = sbr.rel (!%p13_p4) target bundleno = 1 (0x1), region = 82 }

</bundles_post_ra>
